<compile_context>
chip_gen: v5e
topology: v5e:2x2
jax: 0.10.0
libtpu: 0.0.40
codegen_flags: <defaults>
</compile_context>

<pallas_src>
import jax
import jax.numpy as jnp
from jax import lax
from jax.experimental import pallas as pl
from jax.experimental.pallas import tpu as pltpu

HIDDEN_DIM = 128
INPUT_DIM = 4
OUTPUT_DIM = 1
SLAB_ROWS = 8  # one (8, 128) f32 vreg tile; holds w1(4) + b1(1) + w2(1) + b2


def policy_net_kernel(x_ref, p_ref, out_ref):
    x = x_ref[...]                                       # [Bt, INPUT_DIM] f32
    w1 = p_ref[0:INPUT_DIM, :]                           # [4, 128]
    b1 = p_ref[INPUT_DIM:INPUT_DIM + 1, :]               # [1, 128]
    w2 = p_ref[INPUT_DIM + 1:INPUT_DIM + 2, :]           # [1, 128]
    b2 = p_ref[INPUT_DIM + 2:INPUT_DIM + 3, 0:1]         # [1, 1]

    # fc1: one MXU push, [Bt,4] @ [4,128] (exact-f32 via HIGHEST precision).
    h = jnp.dot(x, w1, preferred_element_type=jnp.float32,
                precision=lax.Precision.HIGHEST) + b1
    # ReLU (VPU).
    h = jnp.maximum(h, 0.0)
    # fc2 (out_features == 1): VPU multiply + XLU lane reduction.
    y = jnp.sum(h * w2, axis=-1, keepdims=True) + b2     # [Bt, 1]
    out_ref[...] = y.astype(out_ref.dtype)


def policy_net_forward(x, param_slab):
    """Grid-free path for tiny batches. x: [B, INPUT_DIM] -> [B, 1]."""
    B = x.shape[0]
    return pl.pallas_call(
        policy_net_kernel,
        out_shape=jax.ShapeDtypeStruct((B, OUTPUT_DIM), jnp.float32),
        in_specs=[
            pl.BlockSpec(memory_space=pltpu.MemorySpace.VMEM),   # x
            pl.BlockSpec(memory_space=pltpu.MemorySpace.VMEM),   # param slab
        ],
        out_specs=pl.BlockSpec(memory_space=pltpu.MemorySpace.VMEM),
    )(x, param_slab)


def policy_net_forward_batched(x, param_slab, *, tile_b=2048):
    """Batched RL-rollout path: grid over the batch, slab resident across
    grid steps, parallel batch axis (2x on v7x's two TensorCores)."""
    B = x.shape[0]
    n_tiles = pl.cdiv(B, tile_b)
    Bp = n_tiles * tile_b
    if Bp != B:
        x = jnp.pad(x, ((0, Bp - B), (0, 0)))
    out = pl.pallas_call(
        policy_net_kernel,
        out_shape=jax.ShapeDtypeStruct((Bp, OUTPUT_DIM), jnp.float32),
        grid=(n_tiles,),
        in_specs=[
            pl.BlockSpec((tile_b, INPUT_DIM), lambda i: (i, 0)),     # x tile
            pl.BlockSpec((SLAB_ROWS, HIDDEN_DIM), lambda i: (0, 0)),  # slab (resident)
        ],
        out_specs=pl.BlockSpec((tile_b, OUTPUT_DIM), lambda i: (i, 0)),
        compiler_params=pltpu.CompilerParams(
            dimension_semantics=("parallel",)),
    )(x, param_slab)
    return out[:B]


def init_params(key):
    """Deterministic PyTorch-style init: U(-1/sqrt(fan_in), 1/sqrt(fan_in))."""
    k1, k2, k3, k4 = jax.random.split(key, 4)
    bound1 = 1.0 / jnp.sqrt(INPUT_DIM)
    bound2 = 1.0 / jnp.sqrt(HIDDEN_DIM)
    w1 = jax.random.uniform(k1, (INPUT_DIM, HIDDEN_DIM), jnp.float32,
                            -bound1, bound1)                 # stored [in, out]
    b1 = jax.random.uniform(k2, (1, HIDDEN_DIM), jnp.float32, -bound1, bound1)
    w2_row = jax.random.uniform(k3, (1, HIDDEN_DIM), jnp.float32,
                                -bound2, bound2)             # fc2 as a row
    b2 = jax.random.uniform(k4, (1, 1), jnp.float32, -bound2, bound2)
    return w1, b1, w2_row, b2


def pack_params(w1, b1, w2_row, b2):
    """Pack all parameters into one [8, 128] f32 slab (single VMEM operand)."""
    slab = jnp.zeros((SLAB_ROWS, HIDDEN_DIM), jnp.float32)
    slab = slab.at[0:INPUT_DIM, :].set(w1)
    slab = slab.at[INPUT_DIM, :].set(b1[0])
    slab = slab.at[INPUT_DIM + 1, :].set(w2_row[0])
    slab = slab.at[INPUT_DIM + 2, 0].set(b2[0, 0])
    return slab


if __name__ == "__main__":
    key = jax.random.PRNGKey(0)
    key_x, key_xb, key_p = jax.random.split(key, 3)

    w1, b1, w2_row, b2 = init_params(key_p)
    slab = pack_params(w1, b1, w2_row, b2)

    def ref_forward(xx):
        h = jnp.maximum(
            jnp.dot(xx, w1, precision=lax.Precision.HIGHEST) + b1, 0.0)
        return jnp.dot(h, w2_row.T, precision=lax.Precision.HIGHEST) + b2

    # 1) Tiny-batch grid-free path (matches the original module's usage).
    B = 8
    x = jax.random.normal(key_x, (B, INPUT_DIM), jnp.float32)
    out = jax.block_until_ready(policy_net_forward(x, slab))
    assert out.shape == (B, OUTPUT_DIM)
    assert jnp.allclose(out, ref_forward(x), atol=1e-5, rtol=1e-5)

    # 2) Batched rollout path (grid over batch, parallel semantics, padding).
    Bb = 500
    xb = jax.random.normal(key_xb, (Bb, INPUT_DIM), jnp.float32)
    outb = jax.block_until_ready(
        policy_net_forward_batched(xb, slab, tile_b=128))
    assert outb.shape == (Bb, OUTPUT_DIM)
    assert jnp.allclose(outb, ref_forward(xb), atol=1e-5, rtol=1e-5)

    print("KERNEL_OK")
</pallas_src>

<mosaic_0001>
module attributes {stable_mosaic.version = 11 : i64} {
  func.func @policy_net_kernel(%arg0: memref<8x4xf32, #tpu.memory_space<vmem>>, %arg1: memref<8x128xf32, #tpu.memory_space<vmem>>, %arg2: memref<8x1xf32, #tpu.memory_space<vmem>>) attributes {dimension_semantics = [], scalar_prefetch = 0 : i64, scratch_operands = 0 : i64, tpu.core_type = #tpu.core_type<tc>} {
    %c0 = arith.constant 0 : index
    %c0_0 = arith.constant 0 : index
    %0 = vector.load %arg0[%c0, %c0_0] : memref<8x4xf32, #tpu.memory_space<vmem>>, vector<8x4xf32>
    %c0_1 = arith.constant 0 : index
    %c0_2 = arith.constant 0 : index
    %1 = vector.load %arg1[%c0_1, %c0_2] : memref<8x128xf32, #tpu.memory_space<vmem>>, vector<4x128xf32>
    %c4 = arith.constant 4 : index
    %c0_3 = arith.constant 0 : index
    %2 = vector.load %arg1[%c4, %c0_3] : memref<8x128xf32, #tpu.memory_space<vmem>>, vector<1x128xf32>
    %c5 = arith.constant 5 : index
    %c0_4 = arith.constant 0 : index
    %3 = vector.load %arg1[%c5, %c0_4] : memref<8x128xf32, #tpu.memory_space<vmem>>, vector<1x128xf32>
    %c6 = arith.constant 6 : index
    %c0_5 = arith.constant 0 : index
    %4 = vector.load %arg1[%c6, %c0_5] : memref<8x128xf32, #tpu.memory_space<vmem>>, vector<1x1xf32>
    %cst = arith.constant dense<0.000000e+00> : vector<8x128xf32>
    %5 = tpu.matmul %0, %1, %cst {dimension_numbers = #tpu.dot_dimension_numbers<[1], [0], [0], [1], [0, 0, 1, 1], [], []>, precision = #tpu.contract_precision<fp32>} : vector<8x4xf32>, vector<4x128xf32>, vector<8x128xf32> -> vector<8x128xf32>
    %6 = vector.broadcast %2 : vector<1x128xf32> to vector<8x128xf32>
    %7 = arith.addf %5, %6 : vector<8x128xf32>
    %cst_6 = arith.constant 0.000000e+00 : f32
    %8 = vector.broadcast %cst_6 : f32 to vector<8x128xf32>
    %9 = arith.maximumf %7, %8 : vector<8x128xf32>
    %10 = vector.broadcast %3 : vector<1x128xf32> to vector<8x128xf32>
    %11 = arith.mulf %9, %10 : vector<8x128xf32>
    %cst_7 = arith.constant dense<0.000000e+00> : vector<8xf32>
    %12 = vector.multi_reduction <add>, %11, %cst_7 [1] : vector<8x128xf32> to vector<8xf32>
    %13 = vector.shape_cast %12 : vector<8xf32> to vector<8x1xf32>
    %14 = vector.broadcast %4 : vector<1x1xf32> to vector<8x1xf32>
    %15 = arith.addf %13, %14 : vector<8x1xf32>
    %c0_8 = arith.constant 0 : index
    %c0_9 = arith.constant 0 : index
    %16 = vector.load %arg2[%c0_8, %c0_9] : memref<8x1xf32, #tpu.memory_space<vmem>>, vector<8x1xf32>
    tpu.vector_store %arg2[%c0_8, %c0_9], %15 {strides = array<i32>} : memref<8x1xf32, #tpu.memory_space<vmem>>, vector<8x1xf32>,
    return
  }
}

</mosaic_0001>

<bundles_post_ra>
// kernel: tpu_custom_call.1
= control target key start
LH: loop header
LB: loop body
LE: loop exit
PB: predicated region body
PF: predicated region fallthrough
CT: control target
= control target key end

     0   :  { %vm21_vm0 = vcmask 1043456   ;;  %vm17_vm1 = vcmask 31744   ;;  %vm178_vm2 = vcmask 7168   ;;  %s220_s1 = inlined_call_operand.vmem [shape: f32[8,128], index: 1, kind: input, shape index: {}]   ;;  %s221_s0 = inlined_call_operand.vmem [shape: f32[8,4], index: 0, kind: input, shape index: {}]   ;;  %s222_s2 = inlined_call_operand.vmem [shape: f32[8,1], index: 2, kind: output, shape index: {}]  }
   0x1   :  { %v12_v0 = vld [vmem:[%s220_s1] sm:$0xf]  ;;  %v184_v14 = vld [vmem:[%s220_s1 + $0x4] ss:$0 sm:$0xff]  ;;  %v185_v27 = vld [vmem:[%s220_s1 + $0x5] ss:$0 sm:$0xff] }
   0x2   :  { %v11_v1 = vld [vmem:[%s221_s0] sm:$0xff]  ;;  %v23_v2 = vsel %vm21_vm0, %v12_v0, 0 }
   0x3   :  { %v19_v3 = vsel %vm17_vm1, %v11_v1, 0  ;;  %v40_v4 = vand.u32 4294901760, %v23_v2  ;;  %v186_v30 = vld [vmem:[%s220_s1 + $0x6] ss:$0 sm:$0xff] }
   0x4   :  { %v42_v5 = vand.u32 4294901760, %v19_v3 }
   0x5   :  { %v67_v6 = vsub.f32 %v23_v2, %v40_v4  ;;  %41 = vmatpush.msra.mxu0 %v40_v4  ;;  %117 = vmatpush.msra.mxu3 %v40_v4 }
   0x6   :  { %v43_v7 = vsub.f32 %v19_v3, %v42_v5 }
   0x7   :  { %94 = vmatpush.msra.mxu2 %v67_v6  ;;  %v68_v9 = vand.u32 4294901760, %v67_v6 }
   0x8   :  { %v44_v8 = vand.u32 4294901760, %v43_v7  ;;  %97 = vmatmul.f32.vlgmr.msra.gmra.mxu2 %v43_v7 }
   0x9   :  { %143 = vmatpush.msrb.mxu0 %v68_v9  ;;  %v69_v11 = vsub.f32 %v67_v6, %v68_v9 }
   0xa   :  { %v45_v10 = vsub.f32 %v43_v7, %v44_v8  ;;  %121 = vmatmul.f32.vlgmr.msra.gmra.mxu3 %v44_v8 }
   0xb   :  { %v70_v13 = vand.u32 4294901760, %v69_v11 }
   0xc   :  { %v46_v12 = vand.u32 4294901760, %v45_v10 }
   0xd   :  { %71 = vmatpush.msra.mxu1 %v70_v13 }
   0xe   :  { %47 = vmatmul.f32.vlgmr.msra.gmra.mxu0 %v46_v12  ;;  %73 = vmatmul.f32.vlgmr.msra.gmra.mxu1 %v42_v5 }
   0xf   :  { %165 = vmatpush.msrb.mxu1 %v40_v4 }
  0x16   :  { %145 = vmatmul.f32.vlgmr.msrb.gmra.mxu0 %v42_v5  ;;  %167 = vmatmul.f32.vlgmr.msrb.gmra.mxu1 %v42_v5 }
  0x8b   :  { %v48_v15 = vpop.f32.mrf.mxu0  ;;  %v74_v17 = vpop.f32.mrf.mxu1 }
  0x8c   :  { %v49_v16 = vadd.f32 %v184_v14, %v48_v15  ;;  %v98_v18 = vpop.f32.mrf.mxu2 }
  0x8d   :  { %v122_v20 = vpop.f32.mrf.mxu3 }
  0x8e   :  { %v75_v19 = vadd.f32 %v74_v17, %v49_v16 }
  0x90   :  { %v99_v21 = vadd.f32 %v98_v18, %v75_v19 }
  0x92   :  { %v123_v22 = vadd.f32 %v122_v20, %v99_v21 }
  0x93   :  { %v146_v23 = vpop.f32.mrf.mxu0  ;;  %v168_v25 = vpop.f32.mrf.mxu1 }
  0x94   :  { %v147_v24 = vadd.f32 %v146_v23, %v123_v22 }
  0x96   :  { %v169_v26 = vadd.f32 %v168_v25, %v147_v24 }
  0x98   :  { %v171_v28 = vmax.f32 %v169_v26, 0.0 }
  0x9a   :  { %v173_v29 = vmul.f32 %v185_v27, %v171_v28 }
  0x9c   :  { %174 = vadd.xlane.f32.xlu0 %v173_v29 }
 0x10f   :  { %v175_v31 = vpop.xlane.xlu0 %174 }
 0x110   :  { %v177_v32 = vadd.f32 %v186_v30, %v175_v31 }
 0x112   :  { %179 = vst.msk [vmem:[%s222_s2] sm:$0xff] %vm178_vm2, %v177_v32 }

</bundles_post_ra>
